<compile_context>
chip_gen: v6e
topology: v6e:2x2x1
jax: 0.10.0
libtpu: 0.0.40
codegen_flags: <defaults>
</compile_context>

<pallas_src>
import numpy as np
import jax
import jax.numpy as jnp
from jax import lax
from jax.experimental import pallas as pl
from jax.experimental.pallas import tpu as pltpu


def _round_up(n, m):
    return ((n + m - 1) // m) * m


# ----------------------------------------------------------------------------
# Pallas kernel: one "prototypical" problem per grid step.
#   x_ref   : (1, Qmax, D)  zero-padded embeddings (queries or sampled data)
#   p_ref   : (1, C,    D)  prototypes
#   logp_ref: (1, Qmax, C)  log_softmax(-squared_euclidean_dist, axis=-1)
# ----------------------------------------------------------------------------
def _fused_proto_kernel(x_ref, p_ref, logp_ref):
    x = x_ref[0]                                   # (Qmax, D) f32
    p = p_ref[0]                                   # (C,    D) f32

    # cross term on the MXU: (Qmax, D) x (C, D)^T -> (Qmax, C)
    xp = lax.dot_general(x, p, (((1,), (1,)), ((), ())),
                         preferred_element_type=jnp.float32)

    # prototype squared norms via a lane reduce (XLU), no ones-matmul
    p2 = jnp.sum(p * p, axis=1)[None, :]           # (1, C)

    # -dists up to the per-row constant ||x||^2, which cancels in log_softmax:
    #   -(||x||^2 + ||p||^2 - 2 x.p) == (2 x.p - ||p||^2) - ||x||^2
    neg = 2.0 * xp - p2                            # (Qmax, C)

    # numerically stable log_softmax along the class axis
    m = jnp.max(neg, axis=1, keepdims=True)
    lse = jnp.log(jnp.sum(jnp.exp(neg - m), axis=1, keepdims=True)) + m
    logp_ref[0] = neg - lse


def fused_proto_logp(x_stacked, p_stacked):
    """x_stacked: (2, Qmax, D), p_stacked: (2, C, D) -> logp (2, Qmax, C)."""
    NP, Qmax, D = x_stacked.shape
    C = p_stacked.shape[1]
    return pl.pallas_call(
        _fused_proto_kernel,
        out_shape=jax.ShapeDtypeStruct((NP, Qmax, C), jnp.float32),
        grid=(NP,),
        in_specs=[pl.BlockSpec((1, Qmax, D), lambda i: (i, 0, 0)),
                  pl.BlockSpec((1, C, D), lambda i: (i, 0, 0))],
        out_specs=pl.BlockSpec((1, Qmax, C), lambda i: (i, 0, 0)),
        compiler_params=pltpu.CompilerParams(
            dimension_semantics=("parallel",)),
    )(x_stacked, p_stacked)


# ----------------------------------------------------------------------------
# Jitted device-side forward: one pallas_call + tiny XLA epilogue.
# Returns (overall_loss, y_pred, y_score) -- everything host metrics need.
# ----------------------------------------------------------------------------
def _device_forward(prototypes, q_re, original_prototypes, sampled_data,
                    query_labels):
    Q0, D = q_re.shape
    C = prototypes.shape[0]
    n_cls, n_samp, _ = sampled_data.shape
    Q1 = n_cls * n_samp
    Qmax = _round_up(max(Q0, Q1), 8)

    sampled_flat = sampled_data.reshape(Q1, D).astype(jnp.float32)
    x = jnp.zeros((2, Qmax, D), jnp.float32)
    x = x.at[0, :Q0].set(q_re.astype(jnp.float32))
    x = x.at[1, :Q1].set(sampled_flat)
    p = jnp.stack([prototypes, original_prototypes]).astype(jnp.float32)

    logp = fused_proto_logp(x, p)                  # (2, Qmax, C)
    logp_q = logp[0, :Q0]                          # query log-probs
    logp_g = logp[1, :Q1]                          # generated-sample log-probs

    q_lbl = query_labels.astype(jnp.float32)                          # (Q0, C)
    gen_lbl = jnp.repeat(jnp.eye(C, dtype=jnp.float32), n_samp, axis=0)  # (Q1, C)

    loss = jnp.sum(-q_lbl * logp_q) / (Q0 * C)       # torch.mean(-labels*logp)
    g_loss = jnp.sum(-gen_lbl * logp_g) / (Q1 * C)
    overall_loss = loss + 0.1 * g_loss

    # device-side metric prep (exact torch.where semantics)
    row_max = jnp.max(logp_q, axis=1, keepdims=True)
    y_pred = jnp.where(logp_q >= row_max, 1.0, logp_q)
    y_pred = jnp.where(y_pred < row_max, 0.0, y_pred)
    y_score = jnp.exp(logp_q)                        # == softmax(-dists)
    return overall_loss, y_pred, y_score


_device_forward_jit = jax.jit(_device_forward)


# ----------------------------------------------------------------------------
# Host-side sklearn-equivalent metrics (multilabel indicator inputs)
# ----------------------------------------------------------------------------
def _rankdata(a):
    order = np.argsort(a, kind="mergesort")
    ranks = np.empty(len(a), dtype=np.float64)
    sorted_a = a[order]
    i, cur = 0, 1
    while i < len(a):
        j = i
        while j + 1 < len(a) and sorted_a[j + 1] == sorted_a[i]:
            j += 1
        ranks[order[i:j + 1]] = 0.5 * (cur + cur + (j - i))
        cur += (j - i + 1)
        i = j + 1
    return ranks


def _macro_metrics(y_true, y_pred, y_score):
    tp = np.sum((y_pred == 1) & (y_true == 1), axis=0).astype(np.float64)
    fp = np.sum((y_pred == 1) & (y_true == 0), axis=0).astype(np.float64)
    fn = np.sum((y_pred == 0) & (y_true == 1), axis=0).astype(np.float64)
    prec_c = np.where(tp + fp > 0, tp / np.maximum(tp + fp, 1.0), 0.0)
    rec_c = np.where(tp + fn > 0, tp / np.maximum(tp + fn, 1.0), 0.0)
    f1_c = np.where(2 * tp + fp + fn > 0,
                    2 * tp / np.maximum(2 * tp + fp + fn, 1.0), 0.0)
    p, r, f = prec_c.mean(), rec_c.mean(), f1_c.mean()
    acc = float(np.mean(np.all(y_true == y_pred, axis=1)))
    aucs = []
    for c in range(y_true.shape[1]):
        pos_mask = y_true[:, c] == 1
        n_pos, n_neg = int(pos_mask.sum()), int((~pos_mask).sum())
        if n_pos == 0 or n_neg == 0:
            continue
        ranks = _rankdata(y_score[:, c])
        auc_c = (ranks[pos_mask].sum() - n_pos * (n_pos + 1) / 2.0) / (n_pos * n_neg)
        aucs.append(auc_c)
    auc = float(np.mean(aucs)) if aucs else 0.0
    return float(p), float(r), float(f), acc, auc


# ----------------------------------------------------------------------------
# Loss_fn.forward equivalent
# ----------------------------------------------------------------------------
def loss_fn_forward(model_outputs, labels, num_n_way, num_k_shot, num_q_shot):
    prototypes, q_re, topk_acc, original_prototypes, sampled_data = model_outputs
    support_size = num_n_way * num_k_shot
    query_labels = labels[support_size:]                     # (Q, N) one-hot

    overall_loss, y_pred, y_score = _device_forward_jit(
        prototypes, q_re, original_prototypes, sampled_data, query_labels)

    # single host sync for the sklearn-style metrics
    # TODO(synk): sklearn precision/recall/f1/accuracy/roc_auc have no Pallas
    #             equivalent; re-implemented in numpy on host.
    y_true_np, y_pred_np, y_score_np = jax.device_get(
        (query_labels, y_pred, y_score))
    p, r, f, acc, auc = _macro_metrics(
        np.asarray(y_true_np, dtype=np.float64),
        np.asarray(y_pred_np, dtype=np.float64),
        np.asarray(y_score_np, dtype=np.float64))

    return overall_loss, p, r, f, acc, auc, topk_acc


# ----------------------------------------------------------------------------
# Pure-JAX reference (mirrors torch semantics directly) for a sanity check
# ----------------------------------------------------------------------------
def _ref_overall_loss(model_outputs, labels, num_n_way, num_k_shot):
    prototypes, q_re, _, original_prototypes, sampled_data = model_outputs
    support_size = num_n_way * num_k_shot

    def euclid(x, y):
        return jnp.sum((x[:, None, :] - y[None, :, :]) ** 2, axis=2)

    q_lbl = labels[support_size:].astype(jnp.float32)
    logp = jax.nn.log_softmax(-euclid(q_re, prototypes), axis=1)
    loss = jnp.mean(-q_lbl * logp)

    n_cls, n_samp, d = sampled_data.shape
    gen_lbl = jnp.repeat(jnp.eye(num_n_way, dtype=jnp.float32), n_samp, axis=0)
    glogp = jax.nn.log_softmax(
        -euclid(sampled_data.reshape(-1, d), original_prototypes), axis=1)
    g_loss = jnp.mean(-gen_lbl * glogp)
    return loss + 0.1 * g_loss


# ----------------------------------------------------------------------------
if __name__ == "__main__":
    # args: numNWay=5, numKShot=1, numQShot=5  -> support=5, query=25
    num_n_way, num_k_shot, num_q_shot = 5, 1, 5
    D = 32          # embedding dim
    S = 4           # sampled examples per class

    key = jax.random.PRNGKey(0)
    k1, k2, k3, k4 = jax.random.split(key, 4)
    prototypes = jax.random.normal(k1, (num_n_way, D), dtype=jnp.float32)
    q_re = jax.random.normal(k2, (num_n_way * num_q_shot, D), dtype=jnp.float32)
    original_prototypes = jax.random.normal(k3, (num_n_way, D), dtype=jnp.float32)
    sampled_data = jax.random.normal(k4, (num_n_way, S, D), dtype=jnp.float32)
    topk_acc = jnp.float32(0.87)

    # labels: one-hot (support + query, N); class blocks for support then query
    support_labels = jnp.repeat(jnp.eye(num_n_way, dtype=jnp.float32),
                                num_k_shot, axis=0)
    query_labels = jnp.repeat(jnp.eye(num_n_way, dtype=jnp.float32),
                              num_q_shot, axis=0)
    labels = jnp.concatenate([support_labels, query_labels], axis=0)

    model_outputs = (prototypes, q_re, topk_acc, original_prototypes, sampled_data)

    out = loss_fn_forward(model_outputs, labels, num_n_way, num_k_shot, num_q_shot)
    overall_loss = jax.block_until_ready(out[0])

    # numerical sanity check vs. pure-JAX reference of the torch computation
    ref = jax.block_until_ready(
        _ref_overall_loss(model_outputs, labels, num_n_way, num_k_shot))
    assert np.allclose(np.asarray(overall_loss), np.asarray(ref),
                       rtol=1e-4, atol=1e-4), (overall_loss, ref)

    print("KERNEL_OK")
</pallas_src>

<mosaic_0001>
module attributes {stable_mosaic.version = 11 : i64} {
  func.func @_fused_proto_kernel(%arg0: i32, %arg1: memref<1x32x32xf32, #tpu.memory_space<vmem>>, %arg2: memref<1x5x32xf32, #tpu.memory_space<vmem>>, %arg3: memref<1x32x5xf32, #tpu.memory_space<vmem>>) attributes {dimension_semantics = [#tpu.dimension_semantics<parallel>], iteration_bounds = array<i64: 2>, scalar_prefetch = 0 : i64, scratch_operands = 0 : i64, tpu.core_type = #tpu.core_type<tc>, window_params = [{transform_indices = @transform_0, window_bounds = array<i64: 1, 32, 32>}, {transform_indices = @transform_1, window_bounds = array<i64: 1, 5, 32>}, {transform_indices = @transform_2, window_bounds = array<i64: 1, 32, 5>}]} {
    %c0 = arith.constant 0 : index
    %c0_0 = arith.constant 0 : index
    %c0_1 = arith.constant 0 : index
    %0 = vector.load %arg1[%c0, %c0_0, %c0_1] : memref<1x32x32xf32, #tpu.memory_space<vmem>>, vector<1x32x32xf32>
    %1 = vector.shape_cast %0 : vector<1x32x32xf32> to vector<32x32xf32>
    %c0_2 = arith.constant 0 : index
    %c0_3 = arith.constant 0 : index
    %c0_4 = arith.constant 0 : index
    %2 = vector.load %arg2[%c0_2, %c0_3, %c0_4] : memref<1x5x32xf32, #tpu.memory_space<vmem>>, vector<1x5x32xf32>
    %3 = vector.shape_cast %2 : vector<1x5x32xf32> to vector<5x32xf32>
    %cst = arith.constant dense<0.000000e+00> : vector<32x5xf32>
    %4 = tpu.matmul %1, %3, %cst {dimension_numbers = #tpu.dot_dimension_numbers<[1], [1], [0], [0], [0, 0, 1, 0], [], []>} : vector<32x32xf32>, vector<5x32xf32>, vector<32x5xf32> -> vector<32x5xf32>
    %5 = arith.mulf %3, %3 : vector<5x32xf32>
    %cst_5 = arith.constant dense<0.000000e+00> : vector<5xf32>
    %6 = vector.multi_reduction <add>, %5, %cst_5 [1] : vector<5x32xf32> to vector<5xf32>
    %7 = vector.shape_cast %6 : vector<5xf32> to vector<1x5xf32>
    %cst_6 = arith.constant 2.000000e+00 : f32
    %8 = vector.broadcast %cst_6 : f32 to vector<32x5xf32>
    %9 = arith.mulf %8, %4 : vector<32x5xf32>
    %10 = vector.broadcast %7 : vector<1x5xf32> to vector<32x5xf32>
    %11 = arith.subf %9, %10 : vector<32x5xf32>
    %cst_7 = arith.constant dense<0xFF800000> : vector<32xf32>
    %12 = vector.multi_reduction <maximumf>, %11, %cst_7 [1] : vector<32x5xf32> to vector<32xf32>
    %13 = vector.shape_cast %12 : vector<32xf32> to vector<32x1xf32>
    %14 = vector.broadcast %13 : vector<32x1xf32> to vector<32x5xf32>
    %15 = arith.subf %11, %14 : vector<32x5xf32>
    %16 = math.exp %15 : vector<32x5xf32>
    %cst_8 = arith.constant dense<0.000000e+00> : vector<32xf32>
    %17 = vector.multi_reduction <add>, %16, %cst_8 [1] : vector<32x5xf32> to vector<32xf32>
    %18 = vector.shape_cast %17 : vector<32xf32> to vector<32x1xf32>
    %19 = math.log %18 : vector<32x1xf32>
    %20 = arith.addf %19, %13 : vector<32x1xf32>
    %21 = vector.broadcast %20 : vector<32x1xf32> to vector<32x5xf32>
    %22 = arith.subf %11, %21 : vector<32x5xf32>
    %c0_9 = arith.constant 0 : index
    %c0_10 = arith.constant 0 : index
    %c0_11 = arith.constant 0 : index
    %23 = vector.load %arg3[%c0_9, %c0_10, %c0_11] : memref<1x32x5xf32, #tpu.memory_space<vmem>>, vector<1x32x5xf32>
    %24 = vector.shape_cast %23 : vector<1x32x5xf32> to vector<32x5xf32>
    %25 = vector.shape_cast %22 : vector<32x5xf32> to vector<1x32x5xf32>
    tpu.vector_store %arg3[%c0_9, %c0_10, %c0_11], %25 {strides = array<i32>} : memref<1x32x5xf32, #tpu.memory_space<vmem>>, vector<1x32x5xf32>,
    return
  }
  func.func @transform_0(%arg0: i32) -> (i32, i32, i32) {
    %c0_i32 = arith.constant 0 : i32
    %c0_i32_0 = arith.constant 0 : i32
    %c0_i32_1 = arith.constant 0 : i32
    return %arg0, %c0_i32, %c0_i32_0 : i32, i32, i32
  }
  func.func @transform_1(%arg0: i32) -> (i32, i32, i32) {
    %c0_i32 = arith.constant 0 : i32
    %c0_i32_0 = arith.constant 0 : i32
    %c0_i32_1 = arith.constant 0 : i32
    return %arg0, %c0_i32, %c0_i32_0 : i32, i32, i32
  }
  func.func @transform_2(%arg0: i32) -> (i32, i32, i32) {
    %c0_i32 = arith.constant 0 : i32
    %c0_i32_0 = arith.constant 0 : i32
    %c0_i32_1 = arith.constant 0 : i32
    return %arg0, %c0_i32, %c0_i32_0 : i32, i32, i32
  }
}

</mosaic_0001>

<bundles_post_ra>
// kernel: _device_forward.1
= control target key start
LH: loop header
LB: loop body
LE: loop exit
PB: predicated region body
PF: predicated region fallthrough
CT: control target
= control target key end

     0   :  { %s505_s9 = smov 0   ;;  %s563_s0 = inlined_call_operand.vmem [shape: f32[2,32,32], index: 0, kind: input, shape index: {}]   ;;  %s564_s1 = inlined_call_operand.vmem [shape: f32[2,5,32], index: 1, kind: input, shape index: {}]   ;;  %s565_s2 = inlined_call_operand.vmem [shape: f32[2,32,5], index: 2, kind: output, shape index: {}]  }
   0x1 LB: > { %s424_s10 = sadd.s32 4294967295, %s488_s9   ;;  %p428_p0 = scmp.ge.s32.totalorder %s488_s9, 1  ;;  %s488_s9 = sphi %s505_s9, %s12_s9  }
   0x2   : > { %p121_p1 = scmp.lt.s32.totalorder %s488_s9, 3 }
   0x4   : > { %p122_p2 = pnand %p428_p0, %p121_p1 }
   0x5   : > { %p147_p3 = scmp.lt.s32.totalorder (!%p122_p2), %s424_s10, 1 }
   0x6   : > { %125 = sbr.rel (%p122_p2) target bundleno = 540 (0x21c), region = 28 }
   0xb   : > { %s567_s10 = smov (!%p147_p3, %s424_s10), 1  ;;  %vm166_vm0 = vcmask 261120   ;;  %vm268_vm1 = vcmask 258048   ;;  %v277_v7 = vlaneseq  ;;  %vm300_vm2 = vcmask 39936  }
   0xc   : > { %s431_s11 = sshll.u32 %s567_s10, 3  ;;  %s441_s12 = sshll.u32 %s567_s10, 5 }
   0xd   : > { %s155_s15 = scalar_lea.vmem %s564_s1, %s431_s11  ;;  %s151_s18 = scalar_lea.vmem %s563_s0, %s441_s12  ;;  %v278_v8 = vand.u32 127, %v277_v7  ;;  %v280_v9 = vshrl.u32 %v277_v7, 7 }
   0xe   : > { %v165_v0 = vld [vmem:[%s155_s15] sm:$0x1f]  ;;  %v163_v2 = vld [vmem:[%s151_s18 + $0x10] sm:$0xff]  ;;  %v162_v4 = vld [vmem:[%s151_s18 + $0x8] sm:$0xff]  ;;  %s160_s21 = scalar_lea.vmem %s565_s2, %s441_s12 }
   0xf   : > { %v161_v1 = vld [vmem:[%s151_s18] sm:$0xff]  ;;  %448 = vmatprep.subr.msk.mxu0 %vm166_vm0, %v165_v0  ;;  %456 = vmatprep.subr.msk.mxu1 %vm166_vm0, %v165_v0  ;;  %v267_v3 = vmul.f32 %v165_v0, %v165_v0  ;;  %v164_v5 = vld [vmem:[%s151_s18 + $0x18] sm:$0xff]  ;;  %v281_v10 = vsub.s32 %v278_v8, %v280_v9 }
  0x10   : > { %449 = vmatpush3.xpose.msk.msra.mxu0 %vm166_vm0, %v165_v0  ;;  %457 = vmatpush3.xpose.msk.msra.mxu1 %vm166_vm0, %v165_v0 }
  0x11   : > { %450 = vmatprep.mubr.msk.f32.mxu0 %vm166_vm0, %v161_v1  ;;  %453 = vmatprep.mubr.msk.f32.mxu1 %vm166_vm0, %v163_v2  ;;  %v269_v6 = vsel %vm268_vm1, %v267_v3, 0.0 }
  0x12   : > { %270 = vadd.xlane.f32.xlu0 %v269_v6 }
  0x13   : > { %451 = vmatmul.mubr.msk.f32.vlgmr.msra.gmra.mxu0 %vm166_vm0, %v162_v4  ;;  %454 = vmatmul.mubr.msk.f32.vlgmr.msra.gmra.mxu1 %vm166_vm0, %v164_v5 }
  0x9b   : > { %v271_v11 = vpop.xlane.xlu0 %270 }
  0x9c   : > { %v282_v12 = vrot.slane %v271_v11, %v281_v10 }
  0xd3   : > { %v452_v13 = vpop.f32.mrf.mxu0  ;;  %v455_v14 = vpop.f32.mrf.mxu1 }
  0xd4   : > { %v273_v15 = vmul.f32 2.0, %v452_v13  ;;  %v275_v19 = vmul.f32 2.0, %v455_v14 }
  0xd5   : > { %v248_v16 = vpop.f32.mrf.mxu0  ;;  %v258_v17 = vpop.f32.mrf.mxu1 }
  0xd6   : > { %v297_v18 = vsub.f32 %v273_v15, %v282_v12  ;;  %v272_v20 = vmul.f32 2.0, %v248_v16  ;;  %v274_v21 = vmul.f32 2.0, %v258_v17  ;;  %v536_v25 = vsub.f32 %v275_v19, %v282_v12 }
  0xd8   : > { %v296_v22 = vsub.f32 %v272_v20, %v282_v12  ;;  %v533_v23 = vsub.f32 %v274_v21, %v282_v12  ;;  %v304_v24 = vsel %vm300_vm2, %v297_v18, -inf  ;;  %v310_v28 = vsel %vm300_vm2, %v536_v25, -inf }
  0xd9   : > { %305 = vmax.xlane.f32.xlu1 %v304_v24 }
  0xda   : > { %v301_v26 = vsel %vm300_vm2, %v296_v22, -inf  ;;  %v307_v27 = vsel %vm300_vm2, %v533_v23, -inf }
  0xdb   : > { %302 = vmax.xlane.f32.xlu0 %v301_v26 }
  0xdd   : > { %308 = vmax.xlane.f32.xlu1 %v307_v27 }
  0xdf   : > { %311 = vmax.xlane.f32.xlu0 %v310_v28 }
 0x162   : > { %v306_v29 = vpop.xlane.xlu1 %305 }
 0x163   : > { %v314_v30 = vsub.f32 %v297_v18, %v306_v29 }
 0x164   : > { %v303_v31 = vpop.xlane.xlu0 %302 }
 0x165   : > { %v319_v32 = vmul.f32 1.442695, %v314_v30  ;;  %v313_v33 = vsub.f32 %v296_v22, %v303_v31 }
 0x166   : > { %v309_v34 = vpop.xlane.xlu1 %308 }
 0x167   : > { %466 = vpow2.f32 %v319_v32  ;;  %v317_v35 = vmul.f32 1.442695, %v313_v33  ;;  %v315_v36 = vsub.f32 %v533_v23, %v309_v34 }
 0x168   : > { %v312_v37 = vpop.xlane.xlu0 %311 }
 0x169   : > { %468 = vpow2.f32 %v317_v35  ;;  %v321_v38 = vmul.f32 1.442695, %v315_v36  ;;  %v316_v39 = vsub.f32 %v536_v25, %v312_v37 }
 0x16b   : > { %470 = vpow2.f32 %v321_v38  ;;  %v323_v40 = vmul.f32 1.442695, %v316_v39 }
 0x16d   : > { %472 = vpow2.f32 %v323_v40 }
 0x174   : > { %v467_v41 = vpop.eup %466 }
 0x175   : > { %v328_v42 = vsel %vm300_vm2, %v467_v41, 0.0 }
 0x176   : > { %v469_v43 = vpop.eup %468  ;;  %329 = vadd.xlane.f32.xlu0 %v328_v42 }
 0x177   : > { %v325_v44 = vsel %vm300_vm2, %v469_v43, 0.0 }
 0x178   : > { %v471_v45 = vpop.eup %470  ;;  %326 = vadd.xlane.f32.xlu1 %v325_v44 }
 0x179   : > { %v331_v47 = vsel %vm300_vm2, %v471_v45, 0.0 }
 0x17a   : > { %v473_v46 = vpop.eup %472 }
 0x17b   : > { %v334_v48 = vsel %vm300_vm2, %v473_v46, 0.0 }
 0x17c   : > { %332 = vadd.xlane.f32.xlu1 %v331_v47  ;;  %335 = vadd.xlane.f32.xlu0 %v334_v48 }
 0x1ff   : > { %v330_v49 = vpop.xlane.xlu0 %329 }
 0x200   : > { %474 = vlog2.f32 %v330_v49 }
 0x201   : > { %v327_v50 = vpop.xlane.xlu1 %326 }
 0x202   : > { %476 = vlog2.f32 %v327_v50 }
 0x205   : > { %v333_v51 = vpop.xlane.xlu1 %332  ;;  %v336_v52 = vpop.xlane.xlu0 %335 }
 0x206   : > { %478 = vlog2.f32 %v333_v51 }
 0x207   : > { %480 = vlog2.f32 %v336_v52 }
 0x20d   : > { %v475_v53 = vpop.eup %474 }
 0x20e   : > { %v340_v54 = vmul.f32 0.6931472, %v475_v53 }
 0x20f   : > { %v477_v55 = vpop.eup %476 }
 0x210   : > { %v346_v56 = vadd.f32 %v340_v54, %v306_v29  ;;  %v338_v57 = vmul.f32 0.6931472, %v477_v55 }
 0x212   : > { %v350_v58 = vsub.f32 %v297_v18, %v346_v56  ;;  %v345_v59 = vadd.f32 %v338_v57, %v303_v31 }
 0x213   : > { %v479_v60 = vpop.eup %478 }
 0x214   : > { %v481_v61 = vpop.eup %480  ;;  %354 = vst.msk [vmem:[%s160_s21 + $0x8] sm:$0xff] %vm300_vm2, %v350_v58  ;;  %v349_v62 = vsub.f32 %v296_v22, %v345_v59  ;;  %v342_v63 = vmul.f32 0.6931472, %v479_v60 }
 0x215   : > { %v344_v0 = vmul.f32 0.6931472, %v481_v61 }
 0x216   : > { %353 = vst.msk [vmem:[%s160_s21] sm:$0xff] %vm300_vm2, %v349_v62  ;;  %v347_v1 = vadd.f32 %v342_v63, %v309_v34 }
 0x217   : > { %v348_v2 = vadd.f32 %v344_v0, %v312_v37 }
 0x218   : > { %v351_v3 = vsub.f32 %v533_v23, %v347_v1 }
 0x219   : > { %v352_v4 = vsub.f32 %v536_v25, %v348_v2 }
 0x21a   : > { %355 = vst.msk [vmem:[%s160_s21 + $0x10] sm:$0xff] %vm300_vm2, %v351_v3 }
 0x21b   : > { %356 = vst.msk [vmem:[%s160_s21 + $0x18] sm:$0xff] %vm300_vm2, %v352_v4 }
 0x21c PF: > { %s12_s9 = sadd.s32 1, %s488_s9  }
 0x21d   : > { %p9_p4 = scmp.ge.s32.totalorder %s12_s9, 4  }
 0x21f   :  { %11 = sbr.rel (!%p9_p4) target bundleno = 1 (0x1), region = 61 }

</bundles_post_ra>
